<compile_context>
chip_gen: v7x
topology: tpu7x:2x2x1
jax: 0.10.0
libtpu: 0.0.40
codegen_flags: <defaults>
</compile_context>

<pallas_src>
import jax
import jax.numpy as jnp
from jax import lax
from jax.experimental import pallas as pl
from jax.experimental.pallas import tpu as pltpu


def rnn_kernel(x_ref, w_ref, b_ref, h0_ref, out_ref):
    """Single-invocation RNN recurrence, everything VMEM-resident.

    x_ref  : (L, B, E)     time-major inputs
    w_ref  : (L, H+E, H)   per-step fused weights [[W_h], [W_x]]
    b_ref  : (L, 1, H)     per-step biases
    h0_ref : (B, H)        initial hidden state
    out_ref: (L, B, 2*H)   lane-packed output: [:H] = pre-activation h, [H:] = tanh
    """
    L = x_ref.shape[0]

    def step(t, h_prev):
        # h_prev is the f32 pre-activation carry; cast only for the MXU operand so the
        # bf16 weight path (param_dtype=bf16) keeps an f32 carry + f32 accumulation.
        concat = jnp.concatenate(
            [h_prev.astype(x_ref.dtype), x_ref[t]], axis=1)          # (B, H+E)
        out = (jnp.dot(concat, w_ref[t],
                       preferred_element_type=jnp.float32)
               + b_ref[t])                                           # (B, H) f32
        act = jnp.tanh(out)        # == (e^x - e^-x)/(e^x + e^-x), one EUP op
        out_ref[t] = jnp.concatenate([out, act],
                                     axis=1).astype(out_ref.dtype)   # one 2H-lane store
        return out                                                   # pre-activation carry

    lax.fori_loop(0, L, step, h0_ref[...].astype(jnp.float32), unroll=True)


def rnn_forward(x, weights, biases, h0=None, param_dtype=jnp.float32):
    """x: (1, B, L, E); weights: (L, H+E, H); biases: (L, H).

    Returns (h_seq, out_ary), both (B, L, H): pre-activation hidden states
    (== self.h[:, 1:]) and tanh outputs (== output_ary).
    Set param_dtype=jnp.bfloat16 on v6e/v7x for large shapes (f32 carry/accumulation kept).
    """
    x = x[0]                                         # mirrors `x = x[0]` in the module
    B, L, E = x.shape
    H = weights.shape[-1]
    assert weights.shape == (L, H + E, E and H or H)

    x_t = jnp.transpose(x, (1, 0, 2)).astype(param_dtype)   # (L, B, E) time-major
    w = weights.astype(param_dtype)                         # (L, H+E, H) — kept fused
    b = biases.reshape(L, 1, H).astype(jnp.float32)         # (L, 1, H)
    if h0 is None:
        h0 = jnp.zeros((B, H), jnp.float32)                 # self.h[:, 0, :] == zeros

    vmem = pl.BlockSpec(memory_space=pltpu.MemorySpace.VMEM)
    packed = pl.pallas_call(
        rnn_kernel,
        out_shape=jax.ShapeDtypeStruct((L, B, 2 * H), jnp.float32),
        in_specs=[vmem, vmem, vmem, vmem],
        out_specs=vmem,
        compiler_params=pltpu.CompilerParams(),
    )(x_t, w, b, h0)

    packed = jnp.transpose(packed, (1, 0, 2))        # (B, L, 2H)
    h_seq = packed[:, :, :H]                         # == self.h[:, 1:]
    out_ary = packed[:, :, H:]                       # == output_ary
    return h_seq, out_ary


def rnn_reference(x, weights, biases):
    """Plain-JAX re-implementation of the numpy forward, for verification."""
    x = x[0]
    B, L, E = x.shape
    H = weights.shape[-1]
    h = jnp.zeros((B, H), jnp.float32)
    h_list, o_list = [], []
    for i in range(L):
        concat = jnp.concatenate([h, x[:, i, :]], axis=1)
        out = jnp.matmul(concat, weights[i],
                         preferred_element_type=jnp.float32) + biases[i]
        h = out
        exp_m = jnp.exp(-out)
        exp_p = jnp.exp(out)
        h_list.append(out)
        o_list.append((exp_p - exp_m) / (exp_p + exp_m))
    return jnp.stack(h_list, axis=1), jnp.stack(o_list, axis=1)


if __name__ == "__main__":
    B, L, E, H = 2, 8, 16, 32
    key = jax.random.PRNGKey(0)
    kx, kw, kb = jax.random.split(key, 3)

    # Deterministic synthetic parameters (scaled uniform to keep the
    # pre-activation recurrence numerically stable over L steps).
    x = jax.random.normal(kx, (1, B, L, E), dtype=jnp.float32)
    weights = jax.random.uniform(kw, (L, H + E, H), dtype=jnp.float32) * 0.05
    biases = jax.random.uniform(kb, (L, H), dtype=jnp.float32) * 0.1

    h_seq, out_ary = rnn_forward(x, weights, biases)
    jax.block_until_ready((h_seq, out_ary))

    h_ref, o_ref = rnn_reference(x, weights, biases)
    assert h_seq.shape == (B, L, H) and out_ary.shape == (B, L, H)
    assert jnp.allclose(h_seq, h_ref, rtol=1e-2, atol=1e-2)
    assert jnp.allclose(out_ary, o_ref, rtol=1e-2, atol=1e-2)
    print("KERNEL_OK")
</pallas_src>

<mosaic_0001>
module attributes {stable_mosaic.version = 11 : i64} {
  func.func @rnn_kernel(%arg0: memref<8x2x16xf32, #tpu.memory_space<vmem>>, %arg1: memref<8x48x32xf32, #tpu.memory_space<vmem>>, %arg2: memref<8x1x32xf32, #tpu.memory_space<vmem>>, %arg3: memref<2x32xf32, #tpu.memory_space<vmem>>, %arg4: memref<8x2x64xf32, #tpu.memory_space<vmem>>) attributes {dimension_semantics = [], scalar_prefetch = 0 : i64, scratch_operands = 0 : i64, tpu.core_type = #tpu.core_type<tc>} {
    %c0 = arith.constant 0 : index
    %c0_0 = arith.constant 0 : index
    %0 = vector.load %arg3[%c0, %c0_0] : memref<2x32xf32, #tpu.memory_space<vmem>>, vector<2x32xf32>
    %c0_i32 = arith.constant 0 : i32
    %1 = arith.index_cast %c0_i32 : i32 to index
    %c0_1 = arith.constant 0 : index
    %c0_2 = arith.constant 0 : index
    %2 = vector.load %arg0[%1, %c0_1, %c0_2] : memref<8x2x16xf32, #tpu.memory_space<vmem>>, vector<1x2x16xf32>
    %3 = vector.shape_cast %2 : vector<1x2x16xf32> to vector<2x16xf32>
    %4 = tpu.concatenate %0, %3 in 1 : vector<2x32xf32>, vector<2x16xf32> -> vector<2x48xf32>
    %5 = arith.index_cast %c0_i32 : i32 to index
    %c0_3 = arith.constant 0 : index
    %c0_4 = arith.constant 0 : index
    %6 = vector.load %arg1[%5, %c0_3, %c0_4] : memref<8x48x32xf32, #tpu.memory_space<vmem>>, vector<1x48x32xf32>
    %7 = vector.shape_cast %6 : vector<1x48x32xf32> to vector<48x32xf32>
    %cst = arith.constant dense<0.000000e+00> : vector<2x32xf32>
    %8 = tpu.matmul %4, %7, %cst {dimension_numbers = #tpu.dot_dimension_numbers<[1], [0], [0], [1], [0, 0, 1, 1], [], []>} : vector<2x48xf32>, vector<48x32xf32>, vector<2x32xf32> -> vector<2x32xf32>
    %9 = arith.index_cast %c0_i32 : i32 to index
    %c0_5 = arith.constant 0 : index
    %c0_6 = arith.constant 0 : index
    %10 = vector.load %arg2[%9, %c0_5, %c0_6] : memref<8x1x32xf32, #tpu.memory_space<vmem>>, vector<1x1x32xf32>
    %11 = vector.shape_cast %10 : vector<1x1x32xf32> to vector<1x32xf32>
    %12 = vector.broadcast %11 : vector<1x32xf32> to vector<2x32xf32>
    %13 = arith.addf %8, %12 : vector<2x32xf32>
    %14 = math.tanh %13 : vector<2x32xf32>
    %15 = tpu.concatenate %13, %14 in 1 : vector<2x32xf32>, vector<2x32xf32> -> vector<2x64xf32>
    %16 = arith.index_cast %c0_i32 : i32 to index
    %c0_7 = arith.constant 0 : index
    %c0_8 = arith.constant 0 : index
    %17 = vector.load %arg4[%16, %c0_7, %c0_8] : memref<8x2x64xf32, #tpu.memory_space<vmem>>, vector<1x2x64xf32>
    %18 = vector.shape_cast %17 : vector<1x2x64xf32> to vector<2x64xf32>
    %19 = vector.shape_cast %15 : vector<2x64xf32> to vector<1x2x64xf32>
    tpu.vector_store %arg4[%16, %c0_7, %c0_8], %19 {strides = array<i32>} : memref<8x2x64xf32, #tpu.memory_space<vmem>>, vector<1x2x64xf32>,
    %c1_i32 = arith.constant 1 : i32
    %20 = arith.index_cast %c1_i32 : i32 to index
    %c0_9 = arith.constant 0 : index
    %c0_10 = arith.constant 0 : index
    %21 = vector.load %arg0[%20, %c0_9, %c0_10] : memref<8x2x16xf32, #tpu.memory_space<vmem>>, vector<1x2x16xf32>
    %22 = vector.shape_cast %21 : vector<1x2x16xf32> to vector<2x16xf32>
    %23 = tpu.concatenate %13, %22 in 1 : vector<2x32xf32>, vector<2x16xf32> -> vector<2x48xf32>
    %24 = arith.index_cast %c1_i32 : i32 to index
    %c0_11 = arith.constant 0 : index
    %c0_12 = arith.constant 0 : index
    %25 = vector.load %arg1[%24, %c0_11, %c0_12] : memref<8x48x32xf32, #tpu.memory_space<vmem>>, vector<1x48x32xf32>
    %26 = vector.shape_cast %25 : vector<1x48x32xf32> to vector<48x32xf32>
    %cst_13 = arith.constant dense<0.000000e+00> : vector<2x32xf32>
    %27 = tpu.matmul %23, %26, %cst_13 {dimension_numbers = #tpu.dot_dimension_numbers<[1], [0], [0], [1], [0, 0, 1, 1], [], []>} : vector<2x48xf32>, vector<48x32xf32>, vector<2x32xf32> -> vector<2x32xf32>
    %28 = arith.index_cast %c1_i32 : i32 to index
    %c0_14 = arith.constant 0 : index
    %c0_15 = arith.constant 0 : index
    %29 = vector.load %arg2[%28, %c0_14, %c0_15] : memref<8x1x32xf32, #tpu.memory_space<vmem>>, vector<1x1x32xf32>
    %30 = vector.shape_cast %29 : vector<1x1x32xf32> to vector<1x32xf32>
    %31 = vector.broadcast %30 : vector<1x32xf32> to vector<2x32xf32>
    %32 = arith.addf %27, %31 : vector<2x32xf32>
    %33 = math.tanh %32 : vector<2x32xf32>
    %34 = tpu.concatenate %32, %33 in 1 : vector<2x32xf32>, vector<2x32xf32> -> vector<2x64xf32>
    %35 = arith.index_cast %c1_i32 : i32 to index
    %c0_16 = arith.constant 0 : index
    %c0_17 = arith.constant 0 : index
    %36 = vector.load %arg4[%35, %c0_16, %c0_17] : memref<8x2x64xf32, #tpu.memory_space<vmem>>, vector<1x2x64xf32>
    %37 = vector.shape_cast %36 : vector<1x2x64xf32> to vector<2x64xf32>
    %38 = vector.shape_cast %34 : vector<2x64xf32> to vector<1x2x64xf32>
    tpu.vector_store %arg4[%35, %c0_16, %c0_17], %38 {strides = array<i32>} : memref<8x2x64xf32, #tpu.memory_space<vmem>>, vector<1x2x64xf32>,
    %c2_i32 = arith.constant 2 : i32
    %39 = arith.index_cast %c2_i32 : i32 to index
    %c0_18 = arith.constant 0 : index
    %c0_19 = arith.constant 0 : index
    %40 = vector.load %arg0[%39, %c0_18, %c0_19] : memref<8x2x16xf32, #tpu.memory_space<vmem>>, vector<1x2x16xf32>
    %41 = vector.shape_cast %40 : vector<1x2x16xf32> to vector<2x16xf32>
    %42 = tpu.concatenate %32, %41 in 1 : vector<2x32xf32>, vector<2x16xf32> -> vector<2x48xf32>
    %43 = arith.index_cast %c2_i32 : i32 to index
    %c0_20 = arith.constant 0 : index
    %c0_21 = arith.constant 0 : index
    %44 = vector.load %arg1[%43, %c0_20, %c0_21] : memref<8x48x32xf32, #tpu.memory_space<vmem>>, vector<1x48x32xf32>
    %45 = vector.shape_cast %44 : vector<1x48x32xf32> to vector<48x32xf32>
    %cst_22 = arith.constant dense<0.000000e+00> : vector<2x32xf32>
    %46 = tpu.matmul %42, %45, %cst_22 {dimension_numbers = #tpu.dot_dimension_numbers<[1], [0], [0], [1], [0, 0, 1, 1], [], []>} : vector<2x48xf32>, vector<48x32xf32>, vector<2x32xf32> -> vector<2x32xf32>
    %47 = arith.index_cast %c2_i32 : i32 to index
    %c0_23 = arith.constant 0 : index
    %c0_24 = arith.constant 0 : index
    %48 = vector.load %arg2[%47, %c0_23, %c0_24] : memref<8x1x32xf32, #tpu.memory_space<vmem>>, vector<1x1x32xf32>
    %49 = vector.shape_cast %48 : vector<1x1x32xf32> to vector<1x32xf32>
    %50 = vector.broadcast %49 : vector<1x32xf32> to vector<2x32xf32>
    %51 = arith.addf %46, %50 : vector<2x32xf32>
    %52 = math.tanh %51 : vector<2x32xf32>
    %53 = tpu.concatenate %51, %52 in 1 : vector<2x32xf32>, vector<2x32xf32> -> vector<2x64xf32>
    %54 = arith.index_cast %c2_i32 : i32 to index
    %c0_25 = arith.constant 0 : index
    %c0_26 = arith.constant 0 : index
    %55 = vector.load %arg4[%54, %c0_25, %c0_26] : memref<8x2x64xf32, #tpu.memory_space<vmem>>, vector<1x2x64xf32>
    %56 = vector.shape_cast %55 : vector<1x2x64xf32> to vector<2x64xf32>
    %57 = vector.shape_cast %53 : vector<2x64xf32> to vector<1x2x64xf32>
    tpu.vector_store %arg4[%54, %c0_25, %c0_26], %57 {strides = array<i32>} : memref<8x2x64xf32, #tpu.memory_space<vmem>>, vector<1x2x64xf32>,
    %c3_i32 = arith.constant 3 : i32
    %58 = arith.index_cast %c3_i32 : i32 to index
    %c0_27 = arith.constant 0 : index
    %c0_28 = arith.constant 0 : index
    %59 = vector.load %arg0[%58, %c0_27, %c0_28] : memref<8x2x16xf32, #tpu.memory_space<vmem>>, vector<1x2x16xf32>
    %60 = vector.shape_cast %59 : vector<1x2x16xf32> to vector<2x16xf32>
    %61 = tpu.concatenate %51, %60 in 1 : vector<2x32xf32>, vector<2x16xf32> -> vector<2x48xf32>
    %62 = arith.index_cast %c3_i32 : i32 to index
    %c0_29 = arith.constant 0 : index
    %c0_30 = arith.constant 0 : index
    %63 = vector.load %arg1[%62, %c0_29, %c0_30] : memref<8x48x32xf32, #tpu.memory_space<vmem>>, vector<1x48x32xf32>
    %64 = vector.shape_cast %63 : vector<1x48x32xf32> to vector<48x32xf32>
    %cst_31 = arith.constant dense<0.000000e+00> : vector<2x32xf32>
    %65 = tpu.matmul %61, %64, %cst_31 {dimension_numbers = #tpu.dot_dimension_numbers<[1], [0], [0], [1], [0, 0, 1, 1], [], []>} : vector<2x48xf32>, vector<48x32xf32>, vector<2x32xf32> -> vector<2x32xf32>
    %66 = arith.index_cast %c3_i32 : i32 to index
    %c0_32 = arith.constant 0 : index
    %c0_33 = arith.constant 0 : index
    %67 = vector.load %arg2[%66, %c0_32, %c0_33] : memref<8x1x32xf32, #tpu.memory_space<vmem>>, vector<1x1x32xf32>
    %68 = vector.shape_cast %67 : vector<1x1x32xf32> to vector<1x32xf32>
    %69 = vector.broadcast %68 : vector<1x32xf32> to vector<2x32xf32>
    %70 = arith.addf %65, %69 : vector<2x32xf32>
    %71 = math.tanh %70 : vector<2x32xf32>
    %72 = tpu.concatenate %70, %71 in 1 : vector<2x32xf32>, vector<2x32xf32> -> vector<2x64xf32>
    %73 = arith.index_cast %c3_i32 : i32 to index
    %c0_34 = arith.constant 0 : index
    %c0_35 = arith.constant 0 : index
    %74 = vector.load %arg4[%73, %c0_34, %c0_35] : memref<8x2x64xf32, #tpu.memory_space<vmem>>, vector<1x2x64xf32>
    %75 = vector.shape_cast %74 : vector<1x2x64xf32> to vector<2x64xf32>
    %76 = vector.shape_cast %72 : vector<2x64xf32> to vector<1x2x64xf32>
    tpu.vector_store %arg4[%73, %c0_34, %c0_35], %76 {strides = array<i32>} : memref<8x2x64xf32, #tpu.memory_space<vmem>>, vector<1x2x64xf32>,
    %c4_i32 = arith.constant 4 : i32
    %77 = arith.index_cast %c4_i32 : i32 to index
    %c0_36 = arith.constant 0 : index
    %c0_37 = arith.constant 0 : index
    %78 = vector.load %arg0[%77, %c0_36, %c0_37] : memref<8x2x16xf32, #tpu.memory_space<vmem>>, vector<1x2x16xf32>
    %79 = vector.shape_cast %78 : vector<1x2x16xf32> to vector<2x16xf32>
    %80 = tpu.concatenate %70, %79 in 1 : vector<2x32xf32>, vector<2x16xf32> -> vector<2x48xf32>
    %81 = arith.index_cast %c4_i32 : i32 to index
    %c0_38 = arith.constant 0 : index
    %c0_39 = arith.constant 0 : index
    %82 = vector.load %arg1[%81, %c0_38, %c0_39] : memref<8x48x32xf32, #tpu.memory_space<vmem>>, vector<1x48x32xf32>
    %83 = vector.shape_cast %82 : vector<1x48x32xf32> to vector<48x32xf32>
    %cst_40 = arith.constant dense<0.000000e+00> : vector<2x32xf32>
    %84 = tpu.matmul %80, %83, %cst_40 {dimension_numbers = #tpu.dot_dimension_numbers<[1], [0], [0], [1], [0, 0, 1, 1], [], []>} : vector<2x48xf32>, vector<48x32xf32>, vector<2x32xf32> -> vector<2x32xf32>
    %85 = arith.index_cast %c4_i32 : i32 to index
    %c0_41 = arith.constant 0 : index
    %c0_42 = arith.constant 0 : index
    %86 = vector.load %arg2[%85, %c0_41, %c0_42] : memref<8x1x32xf32, #tpu.memory_space<vmem>>, vector<1x1x32xf32>
    %87 = vector.shape_cast %86 : vector<1x1x32xf32> to vector<1x32xf32>
    %88 = vector.broadcast %87 : vector<1x32xf32> to vector<2x32xf32>
    %89 = arith.addf %84, %88 : vector<2x32xf32>
    %90 = math.tanh %89 : vector<2x32xf32>
    %91 = tpu.concatenate %89, %90 in 1 : vector<2x32xf32>, vector<2x32xf32> -> vector<2x64xf32>
    %92 = arith.index_cast %c4_i32 : i32 to index
    %c0_43 = arith.constant 0 : index
    %c0_44 = arith.constant 0 : index
    %93 = vector.load %arg4[%92, %c0_43, %c0_44] : memref<8x2x64xf32, #tpu.memory_space<vmem>>, vector<1x2x64xf32>
    %94 = vector.shape_cast %93 : vector<1x2x64xf32> to vector<2x64xf32>
    %95 = vector.shape_cast %91 : vector<2x64xf32> to vector<1x2x64xf32>
    tpu.vector_store %arg4[%92, %c0_43, %c0_44], %95 {strides = array<i32>} : memref<8x2x64xf32, #tpu.memory_space<vmem>>, vector<1x2x64xf32>,
    %c5_i32 = arith.constant 5 : i32
    %96 = arith.index_cast %c5_i32 : i32 to index
    %c0_45 = arith.constant 0 : index
    %c0_46 = arith.constant 0 : index
    %97 = vector.load %arg0[%96, %c0_45, %c0_46] : memref<8x2x16xf32, #tpu.memory_space<vmem>>, vector<1x2x16xf32>
    %98 = vector.shape_cast %97 : vector<1x2x16xf32> to vector<2x16xf32>
    %99 = tpu.concatenate %89, %98 in 1 : vector<2x32xf32>, vector<2x16xf32> -> vector<2x48xf32>
    %100 = arith.index_cast %c5_i32 : i32 to index
    %c0_47 = arith.constant 0 : index
    %c0_48 = arith.constant 0 : index
    %101 = vector.load %arg1[%100, %c0_47, %c0_48] : memref<8x48x32xf32, #tpu.memory_space<vmem>>, vector<1x48x32xf32>
    %102 = vector.shape_cast %101 : vector<1x48x32xf32> to vector<48x32xf32>
    %cst_49 = arith.constant dense<0.000000e+00> : vector<2x32xf32>
    %103 = tpu.matmul %99, %102, %cst_49 {dimension_numbers = #tpu.dot_dimension_numbers<[1], [0], [0], [1], [0, 0, 1, 1], [], []>} : vector<2x48xf32>, vector<48x32xf32>, vector<2x32xf32> -> vector<2x32xf32>
    %104 = arith.index_cast %c5_i32 : i32 to index
    %c0_50 = arith.constant 0 : index
    %c0_51 = arith.constant 0 : index
    %105 = vector.load %arg2[%104, %c0_50, %c0_51] : memref<8x1x32xf32, #tpu.memory_space<vmem>>, vector<1x1x32xf32>
    %106 = vector.shape_cast %105 : vector<1x1x32xf32> to vector<1x32xf32>
    %107 = vector.broadcast %106 : vector<1x32xf32> to vector<2x32xf32>
    %108 = arith.addf %103, %107 : vector<2x32xf32>
    %109 = math.tanh %108 : vector<2x32xf32>
    %110 = tpu.concatenate %108, %109 in 1 : vector<2x32xf32>, vector<2x32xf32> -> vector<2x64xf32>
    %111 = arith.index_cast %c5_i32 : i32 to index
    %c0_52 = arith.constant 0 : index
    %c0_53 = arith.constant 0 : index
    %112 = vector.load %arg4[%111, %c0_52, %c0_53] : memref<8x2x64xf32, #tpu.memory_space<vmem>>, vector<1x2x64xf32>
    %113 = vector.shape_cast %112 : vector<1x2x64xf32> to vector<2x64xf32>
    %114 = vector.shape_cast %110 : vector<2x64xf32> to vector<1x2x64xf32>
    tpu.vector_store %arg4[%111, %c0_52, %c0_53], %114 {strides = array<i32>} : memref<8x2x64xf32, #tpu.memory_space<vmem>>, vector<1x2x64xf32>,
    %c6_i32 = arith.constant 6 : i32
    %115 = arith.index_cast %c6_i32 : i32 to index
    %c0_54 = arith.constant 0 : index
    %c0_55 = arith.constant 0 : index
    %116 = vector.load %arg0[%115, %c0_54, %c0_55] : memref<8x2x16xf32, #tpu.memory_space<vmem>>, vector<1x2x16xf32>
    %117 = vector.shape_cast %116 : vector<1x2x16xf32> to vector<2x16xf32>
    %118 = tpu.concatenate %108, %117 in 1 : vector<2x32xf32>, vector<2x16xf32> -> vector<2x48xf32>
    %119 = arith.index_cast %c6_i32 : i32 to index
    %c0_56 = arith.constant 0 : index
    %c0_57 = arith.constant 0 : index
    %120 = vector.load %arg1[%119, %c0_56, %c0_57] : memref<8x48x32xf32, #tpu.memory_space<vmem>>, vector<1x48x32xf32>
    %121 = vector.shape_cast %120 : vector<1x48x32xf32> to vector<48x32xf32>
    %cst_58 = arith.constant dense<0.000000e+00> : vector<2x32xf32>
    %122 = tpu.matmul %118, %121, %cst_58 {dimension_numbers = #tpu.dot_dimension_numbers<[1], [0], [0], [1], [0, 0, 1, 1], [], []>} : vector<2x48xf32>, vector<48x32xf32>, vector<2x32xf32> -> vector<2x32xf32>
    %123 = arith.index_cast %c6_i32 : i32 to index
    %c0_59 = arith.constant 0 : index
    %c0_60 = arith.constant 0 : index
    %124 = vector.load %arg2[%123, %c0_59, %c0_60] : memref<8x1x32xf32, #tpu.memory_space<vmem>>, vector<1x1x32xf32>
    %125 = vector.shape_cast %124 : vector<1x1x32xf32> to vector<1x32xf32>
    %126 = vector.broadcast %125 : vector<1x32xf32> to vector<2x32xf32>
    %127 = arith.addf %122, %126 : vector<2x32xf32>
    %128 = math.tanh %127 : vector<2x32xf32>
    %129 = tpu.concatenate %127, %128 in 1 : vector<2x32xf32>, vector<2x32xf32> -> vector<2x64xf32>
    %130 = arith.index_cast %c6_i32 : i32 to index
    %c0_61 = arith.constant 0 : index
    %c0_62 = arith.constant 0 : index
    %131 = vector.load %arg4[%130, %c0_61, %c0_62] : memref<8x2x64xf32, #tpu.memory_space<vmem>>, vector<1x2x64xf32>
    %132 = vector.shape_cast %131 : vector<1x2x64xf32> to vector<2x64xf32>
    %133 = vector.shape_cast %129 : vector<2x64xf32> to vector<1x2x64xf32>
    tpu.vector_store %arg4[%130, %c0_61, %c0_62], %133 {strides = array<i32>} : memref<8x2x64xf32, #tpu.memory_space<vmem>>, vector<1x2x64xf32>,
    %c7_i32 = arith.constant 7 : i32
    %134 = arith.index_cast %c7_i32 : i32 to index
    %c0_63 = arith.constant 0 : index
    %c0_64 = arith.constant 0 : index
    %135 = vector.load %arg0[%134, %c0_63, %c0_64] : memref<8x2x16xf32, #tpu.memory_space<vmem>>, vector<1x2x16xf32>
    %136 = vector.shape_cast %135 : vector<1x2x16xf32> to vector<2x16xf32>
    %137 = tpu.concatenate %127, %136 in 1 : vector<2x32xf32>, vector<2x16xf32> -> vector<2x48xf32>
    %138 = arith.index_cast %c7_i32 : i32 to index
    %c0_65 = arith.constant 0 : index
    %c0_66 = arith.constant 0 : index
    %139 = vector.load %arg1[%138, %c0_65, %c0_66] : memref<8x48x32xf32, #tpu.memory_space<vmem>>, vector<1x48x32xf32>
    %140 = vector.shape_cast %139 : vector<1x48x32xf32> to vector<48x32xf32>
    %cst_67 = arith.constant dense<0.000000e+00> : vector<2x32xf32>
    %141 = tpu.matmul %137, %140, %cst_67 {dimension_numbers = #tpu.dot_dimension_numbers<[1], [0], [0], [1], [0, 0, 1, 1], [], []>} : vector<2x48xf32>, vector<48x32xf32>, vector<2x32xf32> -> vector<2x32xf32>
    %142 = arith.index_cast %c7_i32 : i32 to index
    %c0_68 = arith.constant 0 : index
    %c0_69 = arith.constant 0 : index
    %143 = vector.load %arg2[%142, %c0_68, %c0_69] : memref<8x1x32xf32, #tpu.memory_space<vmem>>, vector<1x1x32xf32>
    %144 = vector.shape_cast %143 : vector<1x1x32xf32> to vector<1x32xf32>
    %145 = vector.broadcast %144 : vector<1x32xf32> to vector<2x32xf32>
    %146 = arith.addf %141, %145 : vector<2x32xf32>
    %147 = math.tanh %146 : vector<2x32xf32>
    %148 = tpu.concatenate %146, %147 in 1 : vector<2x32xf32>, vector<2x32xf32> -> vector<2x64xf32>
    %149 = arith.index_cast %c7_i32 : i32 to index
    %c0_70 = arith.constant 0 : index
    %c0_71 = arith.constant 0 : index
    %150 = vector.load %arg4[%149, %c0_70, %c0_71] : memref<8x2x64xf32, #tpu.memory_space<vmem>>, vector<1x2x64xf32>
    %151 = vector.shape_cast %150 : vector<1x2x64xf32> to vector<2x64xf32>
    %152 = vector.shape_cast %148 : vector<2x64xf32> to vector<1x2x64xf32>
    tpu.vector_store %arg4[%149, %c0_70, %c0_71], %152 {strides = array<i32>} : memref<8x2x64xf32, #tpu.memory_space<vmem>>, vector<1x2x64xf32>,
    %c8_i32 = arith.constant 8 : i32
    return
  }
}

</mosaic_0001>

<bundles_post_ra>
// kernel: tpu_custom_call.1
= control target key start
LH: loop header
LB: loop body
LE: loop exit
PB: predicated region body
PF: predicated region fallthrough
CT: control target
= control target key end

     0   :  { %s1224_s21 = smov 32   ;;  %v1225_v3 = vmov 0.0|0.0   ;;  %vm1226_vm0 = vmmov 0   ;;  %v1227_v8 = vmov 0.0   ;;  %s1564_s0 = inlined_call_operand.vmem [shape: f32[8,2,16], index: 0, kind: input, shape index: {}]   ;;  %s1565_s1 = inlined_call_operand.vmem [shape: f32[8,48,32], index: 1, kind: input, shape index: {}]   ;;  %s1566_s2 = inlined_call_operand.vmem [shape: f32[8,1,32], index: 2, kind: input, shape index: {}]   ;;  %s1567_s3 = inlined_call_operand.vmem [shape: f32[2,32], index: 3, kind: input, shape index: {}]   ;;  %s1568_s4 = inlined_call_operand.hbm [shape: f32[8,2,64], index: 4, kind: output, shape index: {}]  }
   0x1   :  { %v19_v0 = vld [vmem:[%s1564_s0] sm:$0x3]  ;;  %v27_v2 = vld [vmem:[%s1565_s1 + $0x8] sm:$0xff]  ;;  %1106 = vmatprep.subr.bf16.mxu0 %v1225_v3  ;;  %v28_v5 = vld [vmem:[%s1565_s1 + $0x10] sm:$0xff]  ;;  %998 = vmatprep.mubr.msk.f32.mxu0 %vm1226_vm0, %v1227_v8 }
   0x2   :  { %v26_v1 = vld [vmem:[%s1565_s1] sm:$0xff]  ;;  %21 = vrot.lane.b32.xlu0 %v19_v0, %s1224_s21  ;;  %v29_v6 = vld [vmem:[%s1565_s1 + $0x18] sm:$0xff]  ;;  %1115 = vmatprep.subr.bf16.mxu1 %v1225_v3  ;;  %v861_v11 = vld [vmem:[%s1565_s1 + $0x30] sm:$0xff] }
   0x3   :  { %v1107_v4 = vpack.c.bf16 %v27_v2, %v26_v1  ;;  %v30_v7 = vld [vmem:[%s1565_s1 + $0x20] sm:$0xff]  ;;  %v1110_v10 = vpack.c.bf16 %v29_v6, %v28_v5  ;;  %v862_v12 = vld [vmem:[%s1565_s1 + $0x38] sm:$0xff]  ;;  %1013 = vmatprep.mubr.msk.f32.mxu1 %vm1226_vm0, %v1227_v8  ;;  %v31_v14 = vld [vmem:[%s1565_s1 + $0x28] sm:$0xff] }
   0x4   :  { %v860_v9 = vld [vmem:[%s1564_s0 + $0x2] sm:$0x3]  ;;  %v1116_v15 = vpack.c.bf16 %v862_v12, %v861_v11  ;;  %v864_v16 = vld [vmem:[%s1565_s1 + $0x48] sm:$0xff] }
   0x5   :  { %1108 = vmatpush3.bf16.msra.mxu0 %v1107_v4  ;;  %v863_v13 = vld [vmem:[%s1565_s1 + $0x40] sm:$0xff] }
   0x6   :  { %1109 = vmatprep.subr.bf16.mxu0 %v1225_v3 }
   0x7   :  { %9 = vsyncpa [#allocation3], 0  ;;  %124 = vrot.lane.b32.xlu0 %v860_v9, %s1224_s21  ;;  %1117 = vmatpush3.bf16.msra.mxu1 %v1116_v15  ;;  %v1119_v17 = vpack.c.bf16 %v864_v16, %v863_v13  ;;  %v1113_v18 = vpack.c.bf16 %v31_v14, %v30_v7  ;;  %vm24_vm1 = vcmask 261120   ;;  %v18_v19 = vld [vmem:[%s1567_s3] sm:$0x3]  ;;  %vm39_vm2 = vcmask 392192  }
   0x8   :  { %1118 = vmatprep.subr.bf16.mxu1 %v1225_v3  ;;  %v865_v22 = vld [vmem:[%s1565_s1 + $0x50] sm:$0xff]  ;;  %v866_v23 = vld [vmem:[%s1565_s1 + $0x58] sm:$0xff]  ;;  %v890_v25 = vld [vmem:[%s1564_s0 + $0x8] sm:$0x3]  ;;  %vm119_vm3 = vcmask 517120   ;;  %s1228_s12 = smov [#allocation2]  }
   0x9   :  { %1111 = vmatpush3.bf16.msra.mxu0 %v1110_v10  ;;  %v1122_v24 = vpack.c.bf16 %v866_v23, %v865_v22  ;;  %v910_v26 = vld [vmem:[%s1564_s0 + $0xc] sm:$0x3]  ;;  %v870_v27 = vld [vmem:[%s1564_s0 + $0x4] sm:$0x3]  ;;  %v858_v28 = vld [vmem:[%s1566_s2] ss:$0 sm:$0xff] }
   0xa   :  { %1112 = vmatprep.subr.bf16.mxu0 %v1225_v3  ;;  %227 = vrot.lane.b32.xlu1 %v870_v27, %s1224_s21  ;;  %v871_v33 = vld [vmem:[%s1565_s1 + $0x60] sm:$0xff]  ;;  %v872_v34 = vld [vmem:[%s1565_s1 + $0x68] sm:$0xff]  ;;  %v873_v35 = vld [vmem:[%s1565_s1 + $0x70] sm:$0xff]  ;;  %s847_s13 = sshll.u32 %s1228_s12, 4  ;;  %s848_s13 = int_to_ptr.vmem [resolvable:$true] %s847_s13 }
   0xb   :  { %1120 = vmatpush3.bf16.msra.mxu1 %v1119_v17  ;;  %433 = vrot.lane.b32.xlu0 %v890_v25, %s1224_s21  ;;  %v1125_v37 = vpack.c.bf16 %v872_v34, %v871_v33  ;;  %v874_v38 = vld [vmem:[%s1565_s1 + $0x78] sm:$0xff]  ;;  %v875_v41 = vld [vmem:[%s1565_s1 + $0x80] sm:$0xff]  ;;  %v876_v42 = vld [vmem:[%s1565_s1 + $0x88] sm:$0xff]  ;;  %s1200_s14 = scalar_lea.vmem %s848_s13, 256  ;;  %p1205_p1 = scmp.lt.s32.totalorder %s848_s13, %s848_s13 }
   0xc   :  { %1121 = vmatprep.subr.bf16.mxu1 %v1225_v3  ;;  %v1128_v39 = vpack.c.bf16 %v874_v38, %v873_v35  ;;  %v1131_v43 = vpack.c.bf16 %v876_v42, %v875_v41  ;;  %v880_v44 = vld [vmem:[%s1564_s0 + $0x6] sm:$0x3]  ;;  %v900_v45 = vld [vmem:[%s1564_s0 + $0xa] sm:$0x3]  ;;  %v920_v46 = vld [vmem:[%s1564_s0 + $0xe] sm:$0x3]  ;;  %p1201_p0 = scmp.ne.s32.totalorder %s848_s13, %s1200_s14  ;;  %p1206_p2 = scmp.lt.s32.totalorder %s1200_s14, %s1200_s14 }
   0xd   :  { %1114 = vmatpush3.bf16.msra.mxu0 %v1113_v18  ;;  %v868_v51 = vld [vmem:[%s1566_s2 + $0x1] ss:$0 sm:$0xff]  ;;  %v881_v56 = vld [vmem:[%s1565_s1 + $0x90] sm:$0xff]  ;;  %v882_v57 = vld [vmem:[%s1565_s1 + $0x98] sm:$0xff] }
   0xe   :  { %1124 = vmatprep.subr.bf16.mxu0 %v1225_v3  ;;  %330 = vrot.lane.b32.xlu1 %v880_v44, %s1224_s21  ;;  %v883_v58 = vld [vmem:[%s1565_s1 + $0xa0] sm:$0xff]  ;;  %v1134_v60 = vpack.c.bf16 %v882_v57, %v881_v56  ;;  %v884_v61 = vld [vmem:[%s1565_s1 + $0xa8] sm:$0xff]  ;;  %v885_v0 = vld [vmem:[%s1565_s1 + $0xb0] sm:$0xff]  ;;  %p1207_p3 = por %p1206_p2, %p1205_p1 }
   0xf   :  { %1123 = vmatpush3.bf16.msra.mxu1 %v1122_v24  ;;  %639 = vrot.lane.b32.xlu0 %v910_v26, %s1224_s21  ;;  %v1137_v62 = vpack.c.bf16 %v884_v61, %v883_v58  ;;  %v886_v1 = vld [vmem:[%s1565_s1 + $0xb8] sm:$0xff]  ;;  %v878_v10 = vld [vmem:[%s1566_s2 + $0x2] ss:$0 sm:$0xff]  ;;  %v892_v15 = vld [vmem:[%s1565_s1 + $0xc8] sm:$0xff] }
  0x10   :  { %1133 = vmatprep.subr.bf16.mxu1 %v1225_v3  ;;  %v1140_v2 = vpack.c.bf16 %v886_v1, %v885_v0  ;;  %v891_v14 = vld [vmem:[%s1565_s1 + $0xc0] sm:$0xff]  ;;  %v893_v16 = vld [vmem:[%s1565_s1 + $0xd0] sm:$0xff]  ;;  %v896_v23 = vld [vmem:[%s1565_s1 + $0xe8] sm:$0xff]  ;;  %p1208_p4 = pnand %p1207_p3, %p1201_p0 }
  0x11   :  { %v1143_v18 = vpack.c.bf16 %v892_v15, %v891_v14  ;;  %v895_v22 = vld [vmem:[%s1565_s1 + $0xe0] sm:$0xff]  ;;  %v916_v58 = vld [vmem:[%s1565_s1 + $0x148] sm:$0xff]  ;;  %v921_v1 = vld [vmem:[%s1565_s1 + $0x150] sm:$0xff] }
  0x12   :  { %536 = vrot.lane.b32.xlu1 %v900_v45, %s1224_s21  ;;  %v1149_v24 = vpack.c.bf16 %v896_v23, %v895_v22  ;;  %v888_v27 = vld [vmem:[%s1566_s2 + $0x3] ss:$0 sm:$0xff]  ;;  %v898_v44 = vld [vmem:[%s1566_s2 + $0x4] ss:$0 sm:$0xff]  ;;  %v908_v61 = vld [vmem:[%s1566_s2 + $0x5] ss:$0 sm:$0xff] }
  0x13   :  { %v903_v33 = vld [vmem:[%s1565_s1 + $0x100] sm:$0xff] }
  0x14   :  { %v915_v57 = vld [vmem:[%s1565_s1 + $0x140] sm:$0xff] }
  0x15   :  { %v928_v23 = vld [vmem:[%s1566_s2 + $0x7] ss:$0 sm:$0xff] }
  0x16   :  { %742 = vrot.lane.b32.xlu1 %v920_v46, %s1224_s21 }
  0x74   :  { %v22_v20 = vpop.permute.xlu0 %21 }
  0x75   :  { %v25_v21 = vsel %vm24_vm1, %v18_v19, %v22_v20  ;;  %v894_v19 = vld [vmem:[%s1565_s1 + $0xd8] sm:$0xff] }
  0x76   :  { %999 = vmatmul.mubr.msk.f32.vlgmr.msra.gmra.mrb[0].mxu0 %vm39_vm2, %v25_v21  ;;  %v1146_v20 = vpack.c.bf16 %v894_v19, %v893_v16 }
  0x77   :  { %1028 = vmatprep.mubr.msk.f32.mxu0 %vm1226_vm0, %v1227_v8  ;;  %1126 = vmatpush3.bf16.msra.mxu0 %v1125_v37 }
  0x78   :  { %1127 = vmatprep.subr.bf16.mxu0 %v1225_v3 }
  0x79   :  { %v125_v30 = vpop.permute.xlu0 %124 }
  0x7b   :  { %1129 = vmatpush3.bf16.msra.mxu0 %v1128_v39  ;;  %v905_v39 = vld [vmem:[%s1565_s1 + $0x110] sm:$0xff] }
  0x7c   :  { %1130 = vmatprep.subr.bf16.mxu0 %v1225_v3  ;;  %v228_v53 = vpop.permute.xlu1 %227 }
  0x7d   :  { %v1371_v47 = vpop.permute.xlu0 %433 }
  0x7f   :  { %1132 = vmatpush3.bf16.msra.mxu0 %v1131_v43 }
  0x80   :  { %1142 = vmatprep.subr.bf16.mxu0 %v1225_v3  ;;  %v331_v4 = vpop.permute.xlu1 %330 }
  0x81   :  { %v1373_v48 = vpop.permute.xlu0 %639 }
  0x84   :  { %v1406_v5 = vpop.permute.xlu1 %536 }
  0x88   :  { %v1408_v6 = vpop.permute.xlu1 %742 }
 0x149   :  { %v109_v29 = vpop.f32.mrb[0].mxu0 }
 0x14a   :  { %v110_v31 = vadd.f32 %v858_v28, %v109_v29  ;;  %v1000_v32 = vpop.f32.mrb[1].mxu0 }
 0x14b   :  { %v902_v32 = vld [vmem:[%s1565_s1 + $0xf8] sm:$0xff] }
 0x14c   :  { %1184 = vtanh.f32 %v110_v31  ;;  %v127_v36 = vsel %vm24_vm1, %v110_v31, %v125_v30 }
 0x14d   :  { %1014 = vmatmul.mubr.msk.f32.vlgmr.msra.gmra.mrb[0].mxu1 %vm39_vm2, %v127_v36  ;;  %v904_v36 = vld [vmem:[%s1565_s1 + $0x108] sm:$0xff] }
 0x14e   :  { %1043 = vmatprep.mubr.msk.f32.mxu1 %vm1226_vm0, %v1227_v8  ;;  %1135 = vmatpush3.bf16.msra.mxu1 %v1134_v60  ;;  %v1155_v37 = vpack.c.bf16 %v904_v36, %v903_v33 }
 0x14f   :  { %1136 = vmatprep.subr.bf16.mxu1 %v1225_v3 }
 0x152   :  { %1138 = vmatpush3.bf16.msra.mxu1 %v1137_v62 }
 0x153   :  { %1139 = vmatprep.subr.bf16.mxu1 %v1225_v3 }
 0x156   :  { %v1185_v40 = vpop.eup %1184  ;;  %1141 = vmatpush3.bf16.msra.mxu1 %v1140_v2  ;;  %v922_v2 = vld [vmem:[%s1565_s1 + $0x158] sm:$0xff] }
 0x157   :  { %115 = vrot.lane.b32.xlu0 %v1185_v40, %s1224_s21  ;;  %1151 = vmatprep.subr.bf16.mxu1 %v1225_v3  ;;  %v906_v40 = vld [vmem:[%s1565_s1 + $0x118] sm:$0xff] }
 0x158   :  { %v1158_v41 = vpack.c.bf16 %v906_v40, %v905_v39 }
 0x1c9   :  { %v116_v49 = vpop.permute.xlu0 %115 }
 0x1ca   :  { %v118_v50 = vsel %vm24_vm1, %v110_v31, %v116_v49  ;;  %v901_v31 = vld [vmem:[%s1565_s1 + $0xf0] sm:$0xff]  ;;  %v911_v49 = vld [vmem:[%s1565_s1 + $0x120] sm:$0xff] }
 0x1cb   :  { %120 = vst.msk [vmem:[#allocation2] sm:$0x3] %vm119_vm3, %v118_v50  ;;  %v1152_v35 = vpack.c.bf16 %v902_v32, %v901_v31  ;;  %v912_v50 = vld [vmem:[%s1565_s1 + $0x128] sm:$0xff] }
 0x220   :  { %v212_v52 = vpop.f32.mrb[0].mxu1 }
 0x221   :  { %v213_v54 = vadd.f32 %v868_v51, %v212_v52  ;;  %v1015_v55 = vpop.f32.mrb[1].mxu1  ;;  %v913_v51 = vld [vmem:[%s1565_s1 + $0x130] sm:$0xff] }
 0x223   :  { %1186 = vtanh.f32 %v213_v54  ;;  %v230_v59 = vsel %vm24_vm1, %v213_v54, %v228_v53  ;;  %v1161_v53 = vpack.c.bf16 %v912_v50, %v911_v49 }
 0x224   :  { %1029 = vmatmul.mubr.msk.f32.vlgmr.msra.gmra.mrb[2].mxu0 %vm39_vm2, %v230_v59  ;;  %v1167_v59 = vpack.c.bf16 %v916_v58, %v915_v57 }
 0x225   :  { %1058 = vmatprep.mubr.msk.f32.mxu0 %vm1226_vm0, %v1227_v8  ;;  %1144 = vmatpush3.bf16.msra.mxu0 %v1143_v18 }
 0x226   :  { %1145 = vmatprep.subr.bf16.mxu0 %v1225_v3 }
 0x229   :  { %1147 = vmatpush3.bf16.msra.mxu0 %v1146_v20 }
 0x22a   :  { %1148 = vmatprep.subr.bf16.mxu0 %v1225_v3 }
 0x22d   :  { %v1187_v63 = vpop.eup %1186  ;;  %1150 = vmatpush3.bf16.msra.mxu0 %v1149_v24 }
 0x22e   :  { %218 = vrot.lane.b32.xlu1 %v1187_v63, %s1224_s21  ;;  %1160 = vmatprep.subr.bf16.mxu0 %v1225_v3 }
 0x2a0   :  { %v219_v7 = vpop.permute.xlu1 %218 }
 0x2a1   :  { %v221_v9 = vsel %vm24_vm1, %v213_v54, %v219_v7  ;;  %v914_v54 = vld [vmem:[%s1565_s1 + $0x138] sm:$0xff]  ;;  %v1170_v7 = vpack.c.bf16 %v922_v2, %v921_v1 }
 0x2a2   :  { %223 = vst.msk [vmem:[#allocation2 + $0x2] sm:$0x3] %vm119_vm3, %v221_v9  ;;  %v1164_v55 = vpack.c.bf16 %v914_v54, %v913_v51  ;;  %v924_v9 = vld [vmem:[%s1565_s1 + $0x168] sm:$0xff] }
 0x2f7   :  { %v315_v11 = vpop.f32.mrb[2].mxu0 }
 0x2f8   :  { %v316_v12 = vadd.f32 %v878_v10, %v315_v11  ;;  %v1030_v13 = vpop.f32.mrb[3].mxu0 }
 0x2fa   :  { %1188 = vtanh.f32 %v316_v12  ;;  %v333_v17 = vsel %vm24_vm1, %v316_v12, %v331_v4  ;;  %v923_v4 = vld [vmem:[%s1565_s1 + $0x160] sm:$0xff] }
 0x2fb   :  { %1044 = vmatmul.mubr.msk.f32.vlgmr.msra.gmra.mrb[2].mxu1 %vm39_vm2, %v333_v17  ;;  %v1173_v10 = vpack.c.bf16 %v924_v9, %v923_v4 }
 0x2fc   :  { %1073 = vmatprep.mubr.msk.f32.mxu1 %vm1226_vm0, %v1227_v8  ;;  %1153 = vmatpush3.bf16.msra.mxu1 %v1152_v35 }
 0x2fd   :  { %1154 = vmatprep.subr.bf16.mxu1 %v1225_v3 }
 0x300   :  { %1156 = vmatpush3.bf16.msra.mxu1 %v1155_v37 }
 0x301   :  { %1157 = vmatprep.subr.bf16.mxu1 %v1225_v3 }
 0x304   :  { %v1189_v21 = vpop.eup %1188  ;;  %1159 = vmatpush3.bf16.msra.mxu1 %v1158_v41 }
 0x305   :  { %321 = vrot.lane.b32.xlu0 %v1189_v21, %s1224_s21  ;;  %1169 = vmatprep.subr.bf16.mxu1 %v1225_v3 }
 0x377   :  { %v322_v25 = vpop.permute.xlu0 %321 }
 0x378   :  { %v324_v26 = vsel %vm24_vm1, %v316_v12, %v322_v25  ;;  %v926_v12 = vld [vmem:[%s1565_s1 + $0x178] sm:$0xff] }
 0x379   :  { %326 = vst.msk [vmem:[#allocation2 + $0x4] sm:$0x3] %vm119_vm3, %v324_v26 }
 0x3ce   :  { %v418_v28 = vpop.f32.mrb[2].mxu1 }
 0x3cf   :  { %v419_v29 = vadd.f32 %v888_v27, %v418_v28  ;;  %v1045_v30 = vpop.f32.mrb[3].mxu1 }
 0x3d1   :  { %1190 = vtanh.f32 %v419_v29  ;;  %v436_v34 = vsel %vm24_vm1, %v419_v29, %v1371_v47 }
 0x3d2   :  { %1059 = vmatmul.mubr.msk.f32.vlgmr.msra.gmra.mrb[4].mxu0 %vm39_vm2, %v436_v34 }
 0x3d3   :  { %1088 = vmatprep.mubr.msk.f32.mxu0 %vm1226_vm0, %v1227_v8  ;;  %1162 = vmatpush3.bf16.msra.mxu0 %v1161_v53 }
 0x3d4   :  { %1163 = vmatprep.subr.bf16.mxu0 %v1225_v3 }
 0x3d7   :  { %1165 = vmatpush3.bf16.msra.mxu0 %v1164_v55 }
 0x3d8   :  { %1166 = vmatprep.subr.bf16.mxu0 %v1225_v3 }
 0x3db   :  { %v1191_v38 = vpop.eup %1190  ;;  %1168 = vmatpush3.bf16.msra.mxu0 %v1167_v59 }
 0x3dc   :  { %424 = vrot.lane.b32.xlu1 %v1191_v38, %s1224_s21 }
 0x44e   :  { %v425_v42 = vpop.permute.xlu1 %424 }
 0x44f   :  { %v427_v43 = vsel %vm24_vm1, %v419_v29, %v425_v42 }
 0x450   :  { %429 = vst.msk [vmem:[#allocation2 + $0x6] sm:$0x3] %vm119_vm3, %v427_v43 }
 0x4a5   :  { %v521_v45 = vpop.f32.mrb[4].mxu0 }
 0x4a6   :  { %v522_v46 = vadd.f32 %v898_v44, %v521_v45  ;;  %v1060_v47 = vpop.f32.mrb[5].mxu0 }
 0x4a8   :  { %1192 = vtanh.f32 %v522_v46  ;;  %v539_v52 = vsel %vm24_vm1, %v522_v46, %v1406_v5 }
 0x4a9   :  { %1074 = vmatmul.mubr.msk.f32.vlgmr.msra.gmra.mrb[4].mxu1 %vm39_vm2, %v539_v52 }
 0x4aa   :  { %1103 = vmatprep.mubr.msk.f32.mxu1 %vm1226_vm0, %v1227_v8  ;;  %1171 = vmatpush3.bf16.msra.mxu1 %v1170_v7 }
 0x4ab   :  { %1172 = vmatprep.subr.bf16.mxu1 %v1225_v3 }
 0x4ae   :  { %1174 = vmatpush3.bf16.msra.mxu1 %v1173_v10 }
 0x4af   :  { %1175 = vmatprep.subr.bf16.mxu1 %v1225_v3  ;;  %v918_v3 = vld [vmem:[%s1566_s2 + $0x6] ss:$0 sm:$0xff] }
 0x4b2   :  { %v1193_v56 = vpop.eup %1192 }
 0x4b3   :  { %527 = vrot.lane.b32.xlu0 %v1193_v56, %s1224_s21 }
 0x525   :  { %v528_v60 = vpop.permute.xlu0 %527 }
 0x526   :  { %v530_v8 = vsel %vm24_vm1, %v522_v46, %v528_v60 }
 0x527   :  { %532 = vst.msk [vmem:[#allocation2 + $0x8] sm:$0x3] %vm119_vm3, %v530_v8 }
 0x57c   :  { %v624_v62 = vpop.f32.mrb[4].mxu1 }
 0x57d   :  { %v625_v63 = vadd.f32 %v908_v61, %v624_v62  ;;  %v1075_v0 = vpop.f32.mrb[5].mxu1 }
 0x57f   :  { %1194 = vtanh.f32 %v625_v63  ;;  %v642_v5 = vsel %vm24_vm1, %v625_v63, %v1373_v48  ;;  %v925_v48 = vld [vmem:[%s1565_s1 + $0x170] sm:$0xff] }
 0x580   :  { %1089 = vmatmul.mubr.msk.f32.vlgmr.msra.gmra.mrb[6].mxu0 %vm39_vm2, %v642_v5  ;;  %v1176_v13 = vpack.c.bf16 %v926_v12, %v925_v48 }
 0x582   :  { %1177 = vmatpush3.bf16.msra.mxu1 %v1176_v13 }
 0x589   :  { %v1195_v11 = vpop.eup %1194 }
 0x58a   :  { %630 = vrot.lane.b32.xlu1 %v1195_v11, %s1224_s21 }
 0x5fc   :  { %v631_v14 = vpop.permute.xlu1 %630 }
 0x5fd   :  { %v633_v15 = vsel %vm24_vm1, %v625_v63, %v631_v14 }
 0x5fe   :  { %635 = vst.msk [vmem:[#allocation2 + $0xa] sm:$0x3] %vm119_vm3, %v633_v15 }
 0x653   :  { %v727_v16 = vpop.f32.mrb[6].mxu0 }
 0x654   :  { %v728_v17 = vadd.f32 %v918_v3, %v727_v16  ;;  %v1090_v18 = vpop.f32.mrb[7].mxu0 }
 0x656   :  { %1196 = vtanh.f32 %v728_v17  ;;  %v745_v19 = vsel %vm24_vm1, %v728_v17, %v1408_v6 }
 0x657   :  { %1104 = vmatmul.mubr.msk.f32.vlgmr.msra.gmra.mrb[6].mxu1 %vm39_vm2, %v745_v19 }
 0x660   :  { %v1197_v20 = vpop.eup %1196 }
 0x661   :  { %733 = vrot.lane.b32.xlu0 %v1197_v20, %s1224_s21 }
 0x6d3   :  { %v734_v21 = vpop.permute.xlu0 %733 }
 0x6d4   :  { %v736_v22 = vsel %vm24_vm1, %v728_v17, %v734_v21 }
 0x6d5   :  { %738 = vst.msk [vmem:[#allocation2 + $0xc] sm:$0x3] %vm119_vm3, %v736_v22 }
 0x72a   :  { %v830_v24 = vpop.f32.mrb[6].mxu1 }
 0x72b   :  { %v831_v25 = vadd.f32 %v928_v23, %v830_v24  ;;  %v1105_v26 = vpop.f32.mrb[7].mxu1 }
 0x72d   :  { %1198 = vtanh.f32 %v831_v25 }
 0x737   :  { %v1199_v27 = vpop.eup %1198 }
 0x738   :  { %836 = vrot.lane.b32.xlu1 %v1199_v27, %s1224_s21 }
 0x7aa   :  { %v837_v6 = vpop.permute.xlu1 %836 }
 0x7ab   :  { %v839_v28 = vsel %vm24_vm1, %v831_v25, %v837_v6 }
 0x7ac   :  { %841 = vst.msk [vmem:[#allocation2 + $0xe] sm:$0x3] %vm119_vm3, %v839_v28 }
 0x7ad   :  { %1211 = shalt.err (!%p1208_p4)
}
 0x7ae   :  { %s1212_s16 = scalar_lea.hbm %s1568_s4, 256 }
 0x7af   :  { %p1213_p5 = scmp.ne.s32.totalorder %s1568_s4, %s1212_s16  ;;  %p1216_p6 = scmp.lt.u32.totalorder %s1212_s16, %s1568_s4 }
 0x7b1   :  { %p1218_p7 = pnand %p1216_p6, %p1213_p5 }
 0x7b3   :  { %1221 = shalt.err (!%p1218_p7)
}
 0x7b4   :  { %s1229_s20 = smov 2  }
 0x7b5   :  { %853 = dma.vmem_to_hbm [thread:$0]  %s848_s13, 256, %s1568_s4, [#allocation3], %s1224_s21, %s1224_s21, %s1229_s20  }
 0x7b6   :  { %1222 = dma.done.wait [#allocation3], 256  }
 0x7b7   :  { %1223 = vsyncadd [#allocation3], 4294967040 }
 0x7b8   :  { %857 = vsyncpa [#allocation3], 1 }

</bundles_post_ra>
